<compile_context>
chip_gen: v7x
topology: tpu7x:2x2x1
jax: 0.10.0
libtpu: 0.0.40
codegen_flags: <defaults>
</compile_context>

<pallas_src>
import functools

import jax
import jax.numpy as jnp
from jax.experimental import pallas as pl
from jax.experimental.pallas import tpu as pltpu

_LANE = 128
_ROW_BYTES = 4          # params / running stats are kept in f32 inside the kernel


def _round_up(v, m):
    return ((v + m - 1) // m) * m


def _vmem_capacity_bytes():
    """Physical VMEM of the attached TPU (fallback: v7x's 64 MiB per TC)."""
    try:
        return int(pltpu.get_tpu_info().vmem_capacity_bytes)
    except Exception:
        return 64 * 1024 * 1024


def _emanet_kernel(x_ref, rmx_ref, rMx_ref, scale_ref, bias_ref,
                   y_ref, new_rmx_ref, new_rMx_ref,
                   *, n_type, training, use_running_stats, momentum, eps):
    """One lane-dense feature tile: batch reduction (min/max or mean/std),
    EMA update, and the fused elementwise normalization y = x * a + b."""
    x = x_ref[...].astype(jnp.float32)            # (B, TILE_D)
    rmx = rmx_ref[...]                            # (1, TILE_D) f32
    rMx = rMx_ref[...]                            # (1, TILE_D) f32

    if training:
        if n_type == "minmax":
            batch_mx = jnp.min(x, axis=0, keepdims=True)
            batch_Mx = jnp.max(x, axis=0, keepdims=True)
        else:  # gaussian
            batch_mx = jnp.mean(x, axis=0, keepdims=True)
            var = jnp.mean((x - batch_mx) ** 2, axis=0, keepdims=True)
            batch_Mx = jnp.sqrt(var)              # std, unbiased=False
        # PyTorch reassigns the running-stat buffers *before* normalizing.
        new_rmx = rmx * momentum + batch_mx * (1.0 - momentum)
        new_rMx = rMx * momentum + batch_Mx * (1.0 - momentum)
    else:
        batch_mx, batch_Mx = rmx, rMx
        new_rmx, new_rMx = rmx, rMx

    mx, Mx = (new_rmx, new_rMx) if use_running_stats else (batch_mx, batch_Mx)

    # Per-feature reciprocal (TILE_D elements) instead of a (B, TILE_D) divide.
    denom = (Mx - mx) if n_type == "minmax" else (Mx + eps)
    inv = pl.reciprocal(denom, approx=False)      # (1, TILE_D)

    # Fold scale/bias into per-feature affine coefficients:
    #   y = scale * (x - mx) * inv + bias == x * a + b   (1 mul + 1 add / elem)
    a = scale_ref[...] * inv
    b = bias_ref[...] - mx * a
    y = x * a + b

    y_ref[...] = y.astype(y_ref.dtype)
    new_rmx_ref[...] = new_rmx
    new_rMx_ref[...] = new_rMx


def _fused_jnp_forward(x, running_mx, running_Mx, scale, bias, *,
                       n_type, training, use_running_stats, momentum, eps):
    """Pure-JAX path mirroring the PyTorch forward exactly.  Used both as the
    tiny-problem / huge-batch fallback and as the test reference."""
    n_type = n_type.lower()
    xf = x.astype(jnp.float32)
    rmx = running_mx.astype(jnp.float32)
    rMx = running_Mx.astype(jnp.float32)
    if training:
        if n_type == "minmax":
            batch_mx = jnp.min(xf, axis=0)
            batch_Mx = jnp.max(xf, axis=0)
        else:
            batch_mx = jnp.mean(xf, axis=0)
            batch_Mx = jnp.std(xf, axis=0)        # ddof=0 == unbiased=False
        new_rmx = rmx * momentum + batch_mx * (1.0 - momentum)
        new_rMx = rMx * momentum + batch_Mx * (1.0 - momentum)
    else:
        batch_mx, batch_Mx = rmx, rMx
        new_rmx, new_rMx = rmx, rMx
    mx, Mx = (new_rmx, new_rMx) if use_running_stats else (batch_mx, batch_Mx)
    denom = (Mx - mx) if n_type == "minmax" else (Mx + eps)
    y = scale.astype(jnp.float32) * (xf - mx) / denom + bias.astype(jnp.float32)
    return y.astype(x.dtype), new_rmx, new_rMx


@functools.partial(
    jax.jit,
    static_argnames=("n_type", "training", "use_running_stats", "momentum",
                     "eps", "use_pallas", "vmem_budget_bytes"))
def emanet_forward(x, running_mx, running_Mx, scale, bias, *,
                   n_type="minmax", training=True, use_running_stats=True,
                   momentum=0.99, eps=1e-6,
                   use_pallas=None, vmem_budget_bytes=None):
    """EMANet forward.  Returns (y, new_running_mx, new_running_Mx).

    x: (B, D);  running_mx / running_Mx / scale / bias: (D,)
    """
    B, D = x.shape
    n_type = n_type.lower()
    itemsize = x.dtype.itemsize

    if use_pallas is None:
        # Tiny problems: per-pallas_call overhead dominates; XLA's fused
        # elementwise path is already at roofline.
        use_pallas = (B * D) >= (1 << 14)

    # ---- Generation-aware VMEM budgeting -----------------------------------
    vmem_cap = _vmem_capacity_bytes()              # 128 MiB v5e/v6e, 64 MiB v7x
    vmem_ceiling = (vmem_cap * 3) // 4             # headroom for Mosaic scratch
    budget = vmem_cap // 2 if vmem_budget_bytes is None else vmem_budget_bytes
    budget = min(budget, vmem_ceiling)

    # Double-buffered footprint per feature lane: x + y columns (B rows each,
    # x.dtype) plus 4 f32 parameter/stat input rows and 2 f32 stat output rows.
    bytes_per_lane = 2 * (2 * B * itemsize + 6 * _ROW_BYTES)

    if (not use_pallas) or (bytes_per_lane * _LANE + (4 << 20) > vmem_ceiling):
        # TODO(synk): batch-split two-pass kernel ((1, TILE_D) min/max or
        # sum/sum-sq accumulators over a trailing "arbitrary" B axis) so very
        # large B keeps lane-dense tiles instead of falling back to XLA.
        return _fused_jnp_forward(x, running_mx, running_Mx, scale, bias,
                                  n_type=n_type, training=training,
                                  use_running_stats=use_running_stats,
                                  momentum=momentum, eps=eps)

    # ---- Lane-dense feature tiling (no padding, no wrapper copies) ---------
    d_lanes = _round_up(D, _LANE)
    tile_d = max(_LANE, (budget // bytes_per_lane) // _LANE * _LANE)
    tile_d = min(tile_d, d_lanes)
    if d_lanes >= 2 * _LANE:
        # Guarantee >= 2 grid steps so the "parallel" feature axis can be
        # sharded across both TensorCores on v7x (one extra ~0.35 us grid step
        # on single-TC v5e/v6e is noise).
        tile_d = min(tile_d, _round_up((d_lanes + 1) // 2, _LANE))
    if tile_d >= D:
        tile_d = D          # whole feature axis fits in one exact block
    grid = ((D + tile_d - 1) // tile_d,)
    n_steps = grid[0]
    # Pallas handles the ragged last feature block itself (partial loads and
    # masked stores), so no jnp.pad of x and no y[:, :D] slice copy is needed.

    x_tile_bytes = B * tile_d * itemsize
    # Triple-buffer the streaming x/y tiles when per-step compute is tiny and
    # the grid is long enough for exposed DMA issue latency to matter.
    n_buffers = 3 if (n_steps >= 4 and x_tile_bytes <= (1 << 20)) else 2

    def _mat_spec():
        if n_buffers > 2:
            return pl.BlockSpec((B, tile_d), lambda j: (0, j),
                                pipeline_mode=pl.Buffered(n_buffers))
        return pl.BlockSpec((B, tile_d), lambda j: (0, j))

    row_spec = pl.BlockSpec((1, tile_d), lambda j: (0, j))

    footprint = n_buffers * 2 * x_tile_bytes + 2 * 6 * _ROW_BYTES * tile_d
    vmem_limit = int(min(max(footprint + (4 << 20), 16 << 20), vmem_ceiling))

    # Only the tiny (1, D) parameter / running-stat rows are reshaped/cast.
    rmx_row = running_mx.astype(jnp.float32).reshape(1, D)
    rMx_row = running_Mx.astype(jnp.float32).reshape(1, D)
    sc_row = scale.astype(jnp.float32).reshape(1, D)
    bi_row = bias.astype(jnp.float32).reshape(1, D)

    kernel = functools.partial(
        _emanet_kernel, n_type=n_type, training=training,
        use_running_stats=use_running_stats,
        momentum=float(momentum), eps=float(eps))

    y, new_rmx, new_rMx = pl.pallas_call(
        kernel,
        grid=grid,
        out_shape=(
            jax.ShapeDtypeStruct((B, D), x.dtype),
            jax.ShapeDtypeStruct((1, D), jnp.float32),
            jax.ShapeDtypeStruct((1, D), jnp.float32),
        ),
        in_specs=[_mat_spec(), row_spec, row_spec, row_spec, row_spec],
        out_specs=(_mat_spec(), row_spec, row_spec),
        compiler_params=pltpu.CompilerParams(
            dimension_semantics=("parallel",),
            vmem_limit_bytes=vmem_limit,
        ),
    )(x, rmx_row, rMx_row, sc_row, bi_row)

    return y, new_rmx[0], new_rMx[0]


if __name__ == "__main__":
    key = jax.random.PRNGKey(0)

    def run_case(k, B, D, n_type, training, use_running_stats, name):
        x = jax.random.normal(k, (B, D), dtype=jnp.float32)
        # Deterministic parameter / buffer init, matching EMANet.__init__.
        running_mx = jnp.zeros((D,), jnp.float32)
        running_Mx = jnp.ones((D,), jnp.float32)
        scale = jnp.ones((D,), jnp.float32)
        bias = jnp.zeros((D,), jnp.float32)

        out = emanet_forward(x, running_mx, running_Mx, scale, bias,
                             n_type=n_type, training=training,
                             use_running_stats=use_running_stats,
                             momentum=0.99, eps=1e-6,
                             use_pallas=True)
        jax.block_until_ready(out)
        y, rmx, rMx = out

        y_ref, rmx_ref, rMx_ref = _fused_jnp_forward(
            x, running_mx, running_Mx, scale, bias,
            n_type=n_type, training=training,
            use_running_stats=use_running_stats, momentum=0.99, eps=1e-6)
        assert jnp.allclose(y, y_ref, atol=1e-5, rtol=1e-5), f"{name}: y mismatch"
        assert jnp.allclose(rmx, rmx_ref, atol=1e-5, rtol=1e-5), \
            f"{name}: running_mx mismatch"
        assert jnp.allclose(rMx, rMx_ref, atol=1e-5, rtol=1e-5), \
            f"{name}: running_Mx mismatch"

    keys = jax.random.split(key, 4)
    # (batch_size, input_dim) = (8, 32): module default config + variants.
    run_case(keys[0], 8, 32, "minmax", True, True, "minmax/train/running")
    run_case(keys[1], 8, 32, "gaussian", True, True, "gaussian/train/running")
    run_case(keys[2], 8, 32, "minmax", False, True, "minmax/eval/running")
    # Multi-step feature grid with a ragged (masked) last lane block.
    run_case(keys[3], 8, 400, "minmax", True, False, "minmax/train/batch D=400")

    print("KERNEL_OK")
</pallas_src>

<mosaic_0001>
module attributes {stable_mosaic.version = 11 : i64} {
  func.func @_emanet_kernel(%arg0: i32, %arg1: memref<8x32xf32, #tpu.memory_space<vmem>>, %arg2: memref<1x32xf32, #tpu.memory_space<vmem>>, %arg3: memref<1x32xf32, #tpu.memory_space<vmem>>, %arg4: memref<1x32xf32, #tpu.memory_space<vmem>>, %arg5: memref<1x32xf32, #tpu.memory_space<vmem>>, %arg6: memref<8x32xf32, #tpu.memory_space<vmem>>, %arg7: memref<1x32xf32, #tpu.memory_space<vmem>>, %arg8: memref<1x32xf32, #tpu.memory_space<vmem>>) attributes {dimension_semantics = [#tpu.dimension_semantics<parallel>], iteration_bounds = array<i64: 1>, scalar_prefetch = 0 : i64, scratch_operands = 0 : i64, tpu.core_type = #tpu.core_type<tc>, window_params = [{transform_indices = @transform_0, window_bounds = array<i64: 8, 32>}, {transform_indices = @transform_1, window_bounds = array<i64: 1, 32>}, {transform_indices = @transform_2, window_bounds = array<i64: 1, 32>}, {transform_indices = @transform_3, window_bounds = array<i64: 1, 32>}, {transform_indices = @transform_4, window_bounds = array<i64: 1, 32>}, {transform_indices = @transform_5, window_bounds = array<i64: 8, 32>}, {transform_indices = @transform_6, window_bounds = array<i64: 1, 32>}, {transform_indices = @transform_7, window_bounds = array<i64: 1, 32>}]} {
    %c0 = arith.constant 0 : index
    %c0_0 = arith.constant 0 : index
    %0 = vector.load %arg1[%c0, %c0_0] : memref<8x32xf32, #tpu.memory_space<vmem>>, vector<8x32xf32>
    %c0_1 = arith.constant 0 : index
    %c0_2 = arith.constant 0 : index
    %1 = vector.load %arg2[%c0_1, %c0_2] : memref<1x32xf32, #tpu.memory_space<vmem>>, vector<1x32xf32>
    %c0_3 = arith.constant 0 : index
    %c0_4 = arith.constant 0 : index
    %2 = vector.load %arg3[%c0_3, %c0_4] : memref<1x32xf32, #tpu.memory_space<vmem>>, vector<1x32xf32>
    %cst = arith.constant dense<0x7F800000> : vector<32xf32>
    %3 = vector.multi_reduction <minimumf>, %0, %cst [0] : vector<8x32xf32> to vector<32xf32>
    %4 = vector.shape_cast %3 : vector<32xf32> to vector<1x32xf32>
    %cst_5 = arith.constant dense<0xFF800000> : vector<32xf32>
    %5 = vector.multi_reduction <maximumf>, %0, %cst_5 [0] : vector<8x32xf32> to vector<32xf32>
    %6 = vector.shape_cast %5 : vector<32xf32> to vector<1x32xf32>
    %cst_6 = arith.constant 9.900000e-01 : f32
    %7 = vector.broadcast %cst_6 : f32 to vector<1x32xf32>
    %8 = arith.mulf %1, %7 : vector<1x32xf32>
    %cst_7 = arith.constant 0.00999999977 : f32
    %9 = vector.broadcast %cst_7 : f32 to vector<1x32xf32>
    %10 = arith.mulf %4, %9 : vector<1x32xf32>
    %11 = arith.addf %8, %10 : vector<1x32xf32>
    %cst_8 = arith.constant 9.900000e-01 : f32
    %12 = vector.broadcast %cst_8 : f32 to vector<1x32xf32>
    %13 = arith.mulf %2, %12 : vector<1x32xf32>
    %cst_9 = arith.constant 0.00999999977 : f32
    %14 = vector.broadcast %cst_9 : f32 to vector<1x32xf32>
    %15 = arith.mulf %6, %14 : vector<1x32xf32>
    %16 = arith.addf %13, %15 : vector<1x32xf32>
    %17 = arith.subf %16, %11 : vector<1x32xf32>
    %18 = tpu.reciprocal %17 : vector<1x32xf32> -> vector<1x32xf32>
    %c0_10 = arith.constant 0 : index
    %c0_11 = arith.constant 0 : index
    %19 = vector.load %arg4[%c0_10, %c0_11] : memref<1x32xf32, #tpu.memory_space<vmem>>, vector<1x32xf32>
    %20 = arith.mulf %19, %18 : vector<1x32xf32>
    %c0_12 = arith.constant 0 : index
    %c0_13 = arith.constant 0 : index
    %21 = vector.load %arg5[%c0_12, %c0_13] : memref<1x32xf32, #tpu.memory_space<vmem>>, vector<1x32xf32>
    %22 = arith.mulf %11, %20 : vector<1x32xf32>
    %23 = arith.subf %21, %22 : vector<1x32xf32>
    %24 = vector.broadcast %20 : vector<1x32xf32> to vector<8x32xf32>
    %25 = arith.mulf %0, %24 : vector<8x32xf32>
    %26 = vector.broadcast %23 : vector<1x32xf32> to vector<8x32xf32>
    %27 = arith.addf %25, %26 : vector<8x32xf32>
    %c0_14 = arith.constant 0 : index
    %c0_15 = arith.constant 0 : index
    %28 = vector.load %arg6[%c0_14, %c0_15] : memref<8x32xf32, #tpu.memory_space<vmem>>, vector<8x32xf32>
    tpu.vector_store %arg6[%c0_14, %c0_15], %27 {strides = array<i32>} : memref<8x32xf32, #tpu.memory_space<vmem>>, vector<8x32xf32>,
    %c0_16 = arith.constant 0 : index
    %c0_17 = arith.constant 0 : index
    %29 = vector.load %arg7[%c0_16, %c0_17] : memref<1x32xf32, #tpu.memory_space<vmem>>, vector<1x32xf32>
    tpu.vector_store %arg7[%c0_16, %c0_17], %11 {strides = array<i32>} : memref<1x32xf32, #tpu.memory_space<vmem>>, vector<1x32xf32>,
    %c0_18 = arith.constant 0 : index
    %c0_19 = arith.constant 0 : index
    %30 = vector.load %arg8[%c0_18, %c0_19] : memref<1x32xf32, #tpu.memory_space<vmem>>, vector<1x32xf32>
    tpu.vector_store %arg8[%c0_18, %c0_19], %16 {strides = array<i32>} : memref<1x32xf32, #tpu.memory_space<vmem>>, vector<1x32xf32>,
    return
  }
  func.func @transform_0(%arg0: i32) -> (i32, i32) {
    %c0_i32 = arith.constant 0 : i32
    %c0_i32_0 = arith.constant 0 : i32
    return %c0_i32, %arg0 : i32, i32
  }
  func.func @transform_1(%arg0: i32) -> (i32, i32) {
    %c0_i32 = arith.constant 0 : i32
    %c0_i32_0 = arith.constant 0 : i32
    return %c0_i32, %arg0 : i32, i32
  }
  func.func @transform_2(%arg0: i32) -> (i32, i32) {
    %c0_i32 = arith.constant 0 : i32
    %c0_i32_0 = arith.constant 0 : i32
    return %c0_i32, %arg0 : i32, i32
  }
  func.func @transform_3(%arg0: i32) -> (i32, i32) {
    %c0_i32 = arith.constant 0 : i32
    %c0_i32_0 = arith.constant 0 : i32
    return %c0_i32, %arg0 : i32, i32
  }
  func.func @transform_4(%arg0: i32) -> (i32, i32) {
    %c0_i32 = arith.constant 0 : i32
    %c0_i32_0 = arith.constant 0 : i32
    return %c0_i32, %arg0 : i32, i32
  }
  func.func @transform_5(%arg0: i32) -> (i32, i32) {
    %c0_i32 = arith.constant 0 : i32
    %c0_i32_0 = arith.constant 0 : i32
    return %c0_i32, %arg0 : i32, i32
  }
  func.func @transform_6(%arg0: i32) -> (i32, i32) {
    %c0_i32 = arith.constant 0 : i32
    %c0_i32_0 = arith.constant 0 : i32
    return %c0_i32, %arg0 : i32, i32
  }
  func.func @transform_7(%arg0: i32) -> (i32, i32) {
    %c0_i32 = arith.constant 0 : i32
    %c0_i32_0 = arith.constant 0 : i32
    return %c0_i32, %arg0 : i32, i32
  }
}

</mosaic_0001>

<bundles_post_ra>
// kernel: emanet_forward.1
= control target key start
LH: loop header
LB: loop body
LE: loop exit
PB: predicated region body
PF: predicated region fallthrough
CT: control target
= control target key end

     0   :  { %13 = vsyncpa [#allocation3], 0  ;;  %vm28_vm0 = vcmask 261120   ;;  %s300_s0 = inlined_call_operand.vmem [shape: f32[8,32], index: 0, kind: input, shape index: {}]   ;;  %s301_s1 = inlined_call_operand.vmem [shape: f32[1,32], index: 1, kind: input, shape index: {}]   ;;  %s302_s2 = inlined_call_operand.vmem [shape: f32[1,32], index: 2, kind: input, shape index: {}]   ;;  %s303_s3 = inlined_call_operand.vmem [shape: f32[1,32], index: 3, kind: input, shape index: {}]   ;;  %s304_s4 = inlined_call_operand.vmem [shape: f32[1,32], index: 4, kind: input, shape index: {}]   ;;  %s305_s5 = inlined_call_operand.hbm [shape: f32[8,32], index: 5, kind: output, shape index: {0}]   ;;  %s306_s6 = inlined_call_operand.hbm [shape: f32[1,32], index: 6, kind: output, shape index: {1}]   ;;  %s307_s7 = inlined_call_operand.hbm [shape: f32[1,32], index: 7, kind: output, shape index: {2}]  }
   0x1   :  { %v236_v0 = vld [vmem:[%s300_s0] sm:$0xff] }
   0x2   :  { %v29_v1 = vsel %vm28_vm0, %v236_v0, inf  ;;  %v36_v2 = vsel %vm28_vm0, %v236_v0, -inf }
   0x3   :  { %v30_v3 = vrot.slane %v29_v1, 4  ;;  %v37_v4 = vrot.slane %v36_v2, 4 }
   0x4   :  { %14 = vsyncpa [#allocation5], 0  ;;  %v26_v11 = vld [vmem:[%s301_s1] sm:$0x1]  ;;  %s190_s29 = smov [#allocation4]   ;;  %s191_s8 = smov [#allocation6]  }
   0x5   :  { %v31_v5 = vmin.f32 %v29_v1, %v30_v3  ;;  %v38_v6 = vmax.f32 %v36_v2, %v37_v4  ;;  %v27_v12 = vld [vmem:[%s302_s2] sm:$0x1]  ;;  %v43_v17 = vmul.f32 0.99, %v26_v11  ;;  %s90_s30 = sshll.u32 %s190_s29, 4  ;;  %s100_s9 = sshll.u32 %s191_s8, 4  ;;  %s91_s30 = int_to_ptr.vmem [resolvable:$true] %s90_s30  ;;  %s248_s9 = int_to_ptr.vmem [resolvable:$true] %s100_s9 }
   0x6   :  { %v46_v18 = vmul.f32 0.99, %v27_v12  ;;  %vm71_vm1 = vcmask 253952   ;;  %s120_s1 = scalar_lea.vmem %s91_s30, 16  ;;  %s124_s2 = scalar_lea.vmem %s91_s30, 32 }
   0x7   :  { %v32_v7 = vrot.slane %v31_v5, 2  ;;  %v39_v8 = vrot.slane %v38_v6, 2  ;;  %p121_p0 = scmp.ne.s32.totalorder %s91_s30, %s120_s1  ;;  %p125_p1 = scmp.lt.s32.totalorder %s91_s30, %s91_s30 }
   0x8   :  { %p126_p2 = scmp.lt.s32.totalorder %s124_s2, %s120_s1 }
   0x9   :  { %v33_v9 = vmin.f32 %v31_v5, %v32_v7  ;;  %v40_v10 = vmax.f32 %v38_v6, %v39_v8 }
   0xa   :  { %p127_p3 = por %p126_p2, %p125_p1 }
   0xb   :  { %v34_v13 = vrot.slane %v33_v9, 1  ;;  %v41_v14 = vrot.slane %v40_v10, 1 }
   0xc   :  { %p128_p4 = pnand %p127_p3, %p121_p0 }
   0xd   :  { %v35_v15 = vmin.f32 %v33_v9, %v34_v13  ;;  %v42_v16 = vmax.f32 %v40_v10, %v41_v14 }
   0xf   :  { %v44_v19 = vmul.f32 0.01, %v35_v15  ;;  %v47_v20 = vmul.f32 0.01, %v42_v16 }
  0x11   :  { %v45_v21 = vadd.f32 %v44_v19, %v43_v17  ;;  %v48_v22 = vadd.f32 %v47_v20, %v46_v18 }
  0x13   :  { %v49_v23 = vsub.f32 %v48_v22, %v45_v21  ;;  %72 = vst.msk [vmem:[#allocation4] sm:$0x1] %vm71_vm1, %v45_v21  ;;  %73 = vst.msk [vmem:[#allocation6] sm:$0x1] %vm71_vm1, %v48_v22 }
  0x14   :  { %131 = shalt.err (!%p128_p4)
}
  0x15   :  { %s132_s12 = scalar_lea.hbm %s306_s6, 16 }
  0x16   :  { %p133_p5 = scmp.ne.s32.totalorder %s306_s6, %s132_s12  ;;  %p136_p6 = scmp.lt.u32.totalorder %s132_s12, %s306_s6 }
  0x18   :  { %p138_p7 = pnand %p136_p6, %p133_p5 }
  0x1a   :  { %141 = shalt.err (!%p138_p7)
}
  0x1b   :  { %93 = dma.vmem_to_hbm [thread:$0]  %s91_s30, 16, %s306_s6, [#allocation5]   ;;  %118 = vrcp.f32 %v49_v23 }
  0x1c   :  { %s142_s19 = scalar_lea.vmem %s248_s9, 16  ;;  %s146_s20 = scalar_lea.vmem %s248_s9, 32 }
  0x1d   :  { %p143_p8 = scmp.ne.s32.totalorder %s248_s9, %s142_s19  ;;  %p147_p9 = scmp.lt.s32.totalorder %s248_s9, %s248_s9 }
  0x1e   :  { %p148_p10 = scmp.lt.s32.totalorder %s146_s20, %s142_s19 }
  0x20   :  { %p149_p11 = por %p148_p10, %p147_p9 }
  0x22   :  { %p150_p12 = pnand %p149_p11, %p143_p8 }
  0x24   :  { %153 = shalt.err (!%p150_p12)
}
  0x25   :  { %s154_s23 = scalar_lea.hbm %s307_s7, 16 }
  0x26   :  { %p155_p13 = scmp.ne.s32.totalorder %s307_s7, %s154_s23  ;;  %p158_p0 = scmp.lt.u32.totalorder %s154_s23, %s307_s7 }
  0x28   :  { %p160_p1 = pnand %p158_p0, %p155_p13 }
  0x2a   :  { %163 = shalt.err (!%p160_p1)
}
  0x2b   :  { %103 = dma.vmem_to_hbm [thread:$0]  %s248_s9, 16, %s307_s7, [#allocation5]   ;;  %v57_v24 = vlaneseq  ;;  %v51_v26 = vld [vmem:[%s303_s3] sm:$0x1]  ;;  %v119_v28 = vpop.eup %118 }
  0x2c   :  { %v52_v29 = vmul.f32 %v119_v28, %v51_v26  ;;  %v53_v30 = vld [vmem:[%s304_s4] sm:$0x1]  ;;  %s192_s1 = smov [#allocation2]  }
  0x2d   :  { %v58_v25 = vshrl.u32 %v57_v24, 7  ;;  %s80_s7 = sshll.u32 %s192_s1, 4  ;;  %s81_s7 = int_to_ptr.vmem [resolvable:$true] %s80_s7 }
  0x2e   :  { %v54_v31 = vmul.f32 %v52_v29, %v45_v21  ;;  %s164_s3 = scalar_lea.vmem %s81_s7, 128  ;;  %p169_p3 = scmp.lt.s32.totalorder %s81_s7, %s81_s7 }
  0x2f   :  { %v59_v27 = vsub.s32 0, %v58_v25  ;;  %p165_p2 = scmp.ne.s32.totalorder %s81_s7, %s164_s3  ;;  %p170_p4 = scmp.lt.s32.totalorder %s164_s3, %s164_s3 }
  0x30   :  { %v55_v33 = vsub.f32 %v53_v30, %v54_v31 }
  0x31   :  { %v60_v32 = vrot.slane %v52_v29, %v59_v27  ;;  %p171_p5 = por %p170_p4, %p169_p3 }
  0x32   :  { %v67_v35 = vrot.slane %v55_v33, %v59_v27 }
  0x33   :  { %v62_v34 = vmul.f32 %v60_v32, %v236_v0  ;;  %p172_p6 = pnand %p171_p5, %p165_p2 }
  0x35   :  { %v69_v36 = vadd.f32 %v67_v35, %v62_v34 }
  0x37   :  { %70 = vst.msk [vmem:[#allocation2] sm:$0xff] %vm28_vm0, %v69_v36 }
  0x38   :  { %175 = shalt.err (!%p172_p6)
}
  0x39   :  { %s176_s2 = scalar_lea.hbm %s305_s5, 128 }
  0x3a   :  { %p177_p7 = scmp.ne.s32.totalorder %s305_s5, %s176_s2  ;;  %p180_p8 = scmp.lt.u32.totalorder %s176_s2, %s305_s5 }
  0x3c   :  { %p182_p9 = pnand %p180_p8, %p177_p7 }
  0x3e   :  { %185 = shalt.err (!%p182_p9)
}
  0x3f   :  { %83 = dma.vmem_to_hbm [thread:$0]  %s81_s7, 128, %s305_s5, [#allocation3]  }
  0x40   :  { %186 = dma.done.wait [#allocation3], 128  }
  0x41   :  { %187 = vsyncadd [#allocation3], 4294967168 }
  0x42   :  { %188 = dma.done.wait [#allocation5], 32  }
  0x43   :  { %189 = vsyncadd [#allocation5], 4294967264 }
  0x44   :  { %113 = vsyncpa [#allocation3], 1 }
  0x45   :  { %114 = vsyncpa [#allocation5], 1 }

</bundles_post_ra>
